<compile_context>
chip_gen: v7x
topology: tpu7x:2x2x1
jax: 0.10.0
libtpu: 0.0.40
codegen_flags: <defaults>
</compile_context>

<pallas_src>
import functools
import math

import jax
import jax.numpy as jnp
from jax.experimental import pallas as pl
from jax.experimental.pallas import tpu as pltpu


def _round_up(a, b):
    return (a + b - 1) // b * b


def _expansion_fc_kernel(x_ref, w1_ref, b1_ref, w2_ref, b2_ref, o_ref, *, eps):
    # x_ref:  (TM, Din)   bf16 row tile
    # w1_ref: (Din, Dh)   bf16, LN gamma already folded in
    # b1_ref: (1, Dh)     f32,  b1 + beta @ W1 folded in
    # w2_ref: (Dh, Dout)  bf16
    # b2_ref: (1, Dout)   f32
    # o_ref:  (TM, Dout)  f32
    x = x_ref[...].astype(jnp.float32)

    # LayerNorm statistics in f32 (biased variance, eps inside rsqrt — PyTorch).
    mu = jnp.mean(x, axis=-1, keepdims=True)
    xc = x - mu
    var = jnp.mean(xc * xc, axis=-1, keepdims=True)
    xn = xc * jax.lax.rsqrt(var + eps)

    # Linear1 (+folded LN affine) -> ReLU, f32 accumulation on the MXU.
    h = jnp.dot(xn.astype(jnp.bfloat16), w1_ref[...],
                preferred_element_type=jnp.float32)
    h = jnp.maximum(h + b1_ref[...], 0.0)

    # Linear2, f32 accumulation.
    y = jnp.dot(h.astype(jnp.bfloat16), w2_ref[...],
                preferred_element_type=jnp.float32)
    o_ref[...] = (y + b2_ref[...]).astype(o_ref.dtype)


def expansion_fc(x, w1, b1, w2, b2, ln_gamma, ln_beta, eps=1e-5):
    """x: (..., Din). w1: (Dh, Din), b1: (Dh,), w2: (Dout, Dh), b2: (Dout,).

    Returns (..., Dout) float32. Matches ExpansionFCLayer forward (pre-LN,
    ReLU between the two Linears, dropout in eval mode).
    """
    orig_shape = x.shape
    Din = orig_shape[-1]
    Dh = w1.shape[0]
    Dout = w2.shape[0]
    M = math.prod(orig_shape[:-1]) if len(orig_shape) > 1 else 1

    # --- host-side folds (no per-element scale left in the kernel) ---
    w1_t = jnp.transpose(w1).astype(jnp.float32)            # (Din, Dh)
    w1_f = ln_gamma.astype(jnp.float32)[:, None] * w1_t      # gamma folded
    b1_f = b1.astype(jnp.float32) + ln_beta.astype(jnp.float32) @ w1_t
    w2_t = jnp.transpose(w2).astype(jnp.float32)             # (Dh, Dout)

    # --- flatten rows, pad to the row-tile size ---
    x2 = x.reshape(M, Din)
    TM = min(128, _round_up(M, 8))
    M_pad = _round_up(M, TM)
    if M_pad != M:
        x2 = jnp.pad(x2, ((0, M_pad - M), (0, 0)))

    x_bf = x2.astype(jnp.bfloat16)
    w1_bf = w1_f.astype(jnp.bfloat16)
    w2_bf = w2_t.astype(jnp.bfloat16)
    b1_r = b1_f.reshape(1, Dh)
    b2_r = b2.astype(jnp.float32).reshape(1, Dout)

    out = pl.pallas_call(
        functools.partial(_expansion_fc_kernel, eps=eps),
        out_shape=jax.ShapeDtypeStruct((M_pad, Dout), jnp.float32),
        grid_spec=pltpu.PrefetchScalarGridSpec(
            num_scalar_prefetch=0,
            grid=(M_pad // TM,),
            in_specs=[
                pl.BlockSpec((TM, Din), lambda i: (i, 0)),
                pl.BlockSpec((Din, Dh), lambda i: (0, 0)),
                pl.BlockSpec((1, Dh), lambda i: (0, 0)),
                pl.BlockSpec((Dh, Dout), lambda i: (0, 0)),
                pl.BlockSpec((1, Dout), lambda i: (0, 0)),
            ],
            out_specs=pl.BlockSpec((TM, Dout), lambda i: (i, 0)),
        ),
        compiler_params=pltpu.CompilerParams(
            dimension_semantics=("parallel",)),
    )(x_bf, w1_bf, b1_r, w2_bf, b2_r)

    out = out[:M]
    return out.reshape(*orig_shape[:-1], Dout)


def _reference(x, w1, b1, w2, b2, g, beta, eps=1e-5):
    """Plain-JAX f32 reference reproducing the PyTorch forward."""
    x = x.astype(jnp.float32)
    mu = x.mean(-1, keepdims=True)
    var = ((x - mu) ** 2).mean(-1, keepdims=True)
    xn = (x - mu) / jnp.sqrt(var + eps) * g + beta
    h = jnp.maximum(xn @ w1.T + b1, 0.0)
    return h @ w2.T + b2


if __name__ == "__main__":
    key = jax.random.PRNGKey(0)
    k_x, k_w1, k_b1, k_w2, k_b2, k_g, k_bt = jax.random.split(key, 7)

    # batch=2, seq=8, in_features=32, expansion=4 -> hidden=128, out=32
    B, S, Din = 2, 8, 32
    expansion = 4
    Dh = Din * expansion
    Dout = Din

    x = jax.random.normal(k_x, (B, S, Din), dtype=jnp.float32)
    w1 = jax.random.normal(k_w1, (Dh, Din), dtype=jnp.float32) / jnp.sqrt(Din)
    b1 = 0.1 * jax.random.normal(k_b1, (Dh,), dtype=jnp.float32)
    w2 = jax.random.normal(k_w2, (Dout, Dh), dtype=jnp.float32) / jnp.sqrt(Dh)
    b2 = 0.1 * jax.random.normal(k_b2, (Dout,), dtype=jnp.float32)
    ln_gamma = 1.0 + 0.1 * jax.random.normal(k_g, (Din,), dtype=jnp.float32)
    ln_beta = 0.1 * jax.random.normal(k_bt, (Din,), dtype=jnp.float32)

    out = expansion_fc(x, w1, b1, w2, b2, ln_gamma, ln_beta)
    out = jax.block_until_ready(out)

    ref = _reference(x, w1, b1, w2, b2, ln_gamma, ln_beta)
    assert out.shape == (B, S, Dout), out.shape
    # bf16 matmul streams (f32 accumulation) -> slightly loosened tolerance.
    max_err = float(jnp.max(jnp.abs(out - ref)))
    assert jnp.allclose(out, ref, atol=5e-2, rtol=5e-2), max_err

    print("KERNEL_OK")
</pallas_src>

<mosaic_0001>
module attributes {stable_mosaic.version = 11 : i64} {
  func.func @_expansion_fc_kernel(%arg0: i32, %arg1: memref<16x32xbf16, #tpu.memory_space<vmem>>, %arg2: memref<32x128xbf16, #tpu.memory_space<vmem>>, %arg3: memref<1x128xf32, #tpu.memory_space<vmem>>, %arg4: memref<128x32xbf16, #tpu.memory_space<vmem>>, %arg5: memref<1x32xf32, #tpu.memory_space<vmem>>, %arg6: memref<16x32xf32, #tpu.memory_space<vmem>>) attributes {dimension_semantics = [#tpu.dimension_semantics<parallel>], iteration_bounds = array<i64: 1>, scalar_prefetch = 0 : i64, scratch_operands = 0 : i64, tpu.core_type = #tpu.core_type<tc>, window_params = [{transform_indices = @transform_0, window_bounds = array<i64: 16, 32>}, {pipeline_mode = #tpu.pipeline_mode<synchronous>, transform_indices = @transform_1, window_bounds = array<i64: 32, 128>}, {pipeline_mode = #tpu.pipeline_mode<synchronous>, transform_indices = @transform_2, window_bounds = array<i64: 1, 128>}, {pipeline_mode = #tpu.pipeline_mode<synchronous>, transform_indices = @transform_3, window_bounds = array<i64: 128, 32>}, {pipeline_mode = #tpu.pipeline_mode<synchronous>, transform_indices = @transform_4, window_bounds = array<i64: 1, 32>}, {transform_indices = @transform_5, window_bounds = array<i64: 16, 32>}]} {
    %c0 = arith.constant 0 : index
    %c0_0 = arith.constant 0 : index
    %0 = vector.load %arg1[%c0, %c0_0] : memref<16x32xbf16, #tpu.memory_space<vmem>>, vector<16x32xbf16>
    %1 = arith.extf %0 : vector<16x32xbf16> to vector<16x32xf32>
    %cst = arith.constant dense<0.000000e+00> : vector<16xf32>
    %2 = vector.multi_reduction <add>, %1, %cst [1] : vector<16x32xf32> to vector<16xf32>
    %3 = vector.shape_cast %2 : vector<16xf32> to vector<16x1xf32>
    %cst_1 = arith.constant 3.200000e+01 : f32
    %4 = vector.broadcast %cst_1 : f32 to vector<16x1xf32>
    %5 = arith.divf %3, %4 : vector<16x1xf32>
    %6 = vector.broadcast %5 : vector<16x1xf32> to vector<16x32xf32>
    %7 = arith.subf %1, %6 : vector<16x32xf32>
    %8 = arith.mulf %7, %7 : vector<16x32xf32>
    %cst_2 = arith.constant dense<0.000000e+00> : vector<16xf32>
    %9 = vector.multi_reduction <add>, %8, %cst_2 [1] : vector<16x32xf32> to vector<16xf32>
    %10 = vector.shape_cast %9 : vector<16xf32> to vector<16x1xf32>
    %cst_3 = arith.constant 3.200000e+01 : f32
    %11 = vector.broadcast %cst_3 : f32 to vector<16x1xf32>
    %12 = arith.divf %10, %11 : vector<16x1xf32>
    %cst_4 = arith.constant 9.99999974E-6 : f32
    %13 = vector.broadcast %cst_4 : f32 to vector<16x1xf32>
    %14 = arith.addf %12, %13 : vector<16x1xf32>
    %15 = math.rsqrt %14 : vector<16x1xf32>
    %16 = vector.broadcast %15 : vector<16x1xf32> to vector<16x32xf32>
    %17 = arith.mulf %7, %16 : vector<16x32xf32>
    %18 = arith.truncf %17 : vector<16x32xf32> to vector<16x32xbf16>
    %c0_5 = arith.constant 0 : index
    %c0_6 = arith.constant 0 : index
    %19 = vector.load %arg2[%c0_5, %c0_6] : memref<32x128xbf16, #tpu.memory_space<vmem>>, vector<32x128xbf16>
    %cst_7 = arith.constant dense<0.000000e+00> : vector<16x128xf32>
    %20 = tpu.matmul %18, %19, %cst_7 {dimension_numbers = #tpu.dot_dimension_numbers<[1], [0], [0], [1], [0, 0, 1, 1], [], []>} : vector<16x32xbf16>, vector<32x128xbf16>, vector<16x128xf32> -> vector<16x128xf32>
    %c0_8 = arith.constant 0 : index
    %c0_9 = arith.constant 0 : index
    %21 = vector.load %arg3[%c0_8, %c0_9] : memref<1x128xf32, #tpu.memory_space<vmem>>, vector<1x128xf32>
    %22 = vector.broadcast %21 : vector<1x128xf32> to vector<16x128xf32>
    %23 = arith.addf %20, %22 : vector<16x128xf32>
    %cst_10 = arith.constant 0.000000e+00 : f32
    %24 = vector.broadcast %cst_10 : f32 to vector<16x128xf32>
    %25 = arith.maximumf %23, %24 : vector<16x128xf32>
    %26 = arith.truncf %25 : vector<16x128xf32> to vector<16x128xbf16>
    %c0_11 = arith.constant 0 : index
    %c0_12 = arith.constant 0 : index
    %27 = vector.load %arg4[%c0_11, %c0_12] : memref<128x32xbf16, #tpu.memory_space<vmem>>, vector<128x32xbf16>
    %cst_13 = arith.constant dense<0.000000e+00> : vector<16x32xf32>
    %28 = tpu.matmul %26, %27, %cst_13 {dimension_numbers = #tpu.dot_dimension_numbers<[1], [0], [0], [1], [0, 0, 1, 1], [], []>} : vector<16x128xbf16>, vector<128x32xbf16>, vector<16x32xf32> -> vector<16x32xf32>
    %c0_14 = arith.constant 0 : index
    %c0_15 = arith.constant 0 : index
    %29 = vector.load %arg5[%c0_14, %c0_15] : memref<1x32xf32, #tpu.memory_space<vmem>>, vector<1x32xf32>
    %30 = vector.broadcast %29 : vector<1x32xf32> to vector<16x32xf32>
    %31 = arith.addf %28, %30 : vector<16x32xf32>
    %c0_16 = arith.constant 0 : index
    %c0_17 = arith.constant 0 : index
    %32 = vector.load %arg6[%c0_16, %c0_17] : memref<16x32xf32, #tpu.memory_space<vmem>>, vector<16x32xf32>
    tpu.vector_store %arg6[%c0_16, %c0_17], %31 {strides = array<i32>} : memref<16x32xf32, #tpu.memory_space<vmem>>, vector<16x32xf32>,
    return
  }
  func.func @transform_0(%arg0: i32) -> (i32, i32) {
    %c0_i32 = arith.constant 0 : i32
    %c0_i32_0 = arith.constant 0 : i32
    return %arg0, %c0_i32 : i32, i32
  }
  func.func @transform_1(%arg0: i32) -> (i32, i32) {
    %c0_i32 = arith.constant 0 : i32
    %c0_i32_0 = arith.constant 0 : i32
    %c0_i32_1 = arith.constant 0 : i32
    return %c0_i32, %c0_i32_0 : i32, i32
  }
  func.func @transform_2(%arg0: i32) -> (i32, i32) {
    %c0_i32 = arith.constant 0 : i32
    %c0_i32_0 = arith.constant 0 : i32
    %c0_i32_1 = arith.constant 0 : i32
    return %c0_i32, %c0_i32_0 : i32, i32
  }
  func.func @transform_3(%arg0: i32) -> (i32, i32) {
    %c0_i32 = arith.constant 0 : i32
    %c0_i32_0 = arith.constant 0 : i32
    %c0_i32_1 = arith.constant 0 : i32
    return %c0_i32, %c0_i32_0 : i32, i32
  }
  func.func @transform_4(%arg0: i32) -> (i32, i32) {
    %c0_i32 = arith.constant 0 : i32
    %c0_i32_0 = arith.constant 0 : i32
    %c0_i32_1 = arith.constant 0 : i32
    return %c0_i32, %c0_i32_0 : i32, i32
  }
  func.func @transform_5(%arg0: i32) -> (i32, i32) {
    %c0_i32 = arith.constant 0 : i32
    %c0_i32_0 = arith.constant 0 : i32
    return %arg0, %c0_i32 : i32, i32
  }
}

</mosaic_0001>

<bundles_post_ra>
// kernel: tpu_custom_call.1
= control target key start
LH: loop header
LB: loop body
LE: loop exit
PB: predicated region body
PF: predicated region fallthrough
CT: control target
= control target key end

     0   :  { %vm26_vm0 = vcmask 261120   ;;  %s448_s0 = inlined_call_operand.vmem [shape: bf16[16,32], index: 0, kind: input, shape index: {}]   ;;  %s449_s1 = inlined_call_operand.vmem [shape: bf16[32,128], index: 1, kind: input, shape index: {}]   ;;  %s450_s2 = inlined_call_operand.vmem [shape: f32[1,128], index: 2, kind: input, shape index: {}]   ;;  %s451_s3 = inlined_call_operand.vmem [shape: bf16[128,32], index: 3, kind: input, shape index: {}]   ;;  %s452_s4 = inlined_call_operand.vmem [shape: f32[1,32], index: 4, kind: input, shape index: {}]   ;;  %s453_s5 = inlined_call_operand.hbm [shape: f32[16,32], index: 5, kind: output, shape index: {}]  }
   0x1   :  { %v269_v0 = vld [vmem:[%s448_s0] sm:$0xff]  }
   0x2   :  { %v270_v1 = vunpack.c.l.bf16 %v269_v0  ;;  %v271_v2 = vunpack.c.h.bf16 %v269_v0 }
   0x4   :  { %v27_v3 = vsel %vm26_vm0, %v270_v1, 0.0  ;;  %v30_v4 = vsel %vm26_vm0, %v271_v2, 0.0 }
   0x5   :  { %28 = vadd.xlane.f32.xlu0 %v27_v3 }
   0x6   :  { %10 = vsyncpa [#allocation3], 0  ;;  %v317_v15 = vld [vmem:[%s449_s1] sm:$0xff]   ;;  %v355_v16 = vmov 0.0   ;;  %vm356_vm1 = vmmov 0   ;;  %v318_v17 = vld [vmem:[%s449_s1 + $0x8] sm:$0xff]  }
   0x7   :  { %284 = vmatprep.subr.bf16.mxu0 %v355_v16  ;;  %288 = vmatprep.mubr.msk.bf16.mxu0 %vm356_vm1, %v355_v16  ;;  %v319_v18 = vld [vmem:[%s451_s3] sm:$0xff]   ;;  %v320_v19 = vld [vmem:[%s451_s3 + $0x8] sm:$0xff]   ;;  %v321_v20 = vld [vmem:[%s451_s3 + $0x10] sm:$0xff]  }
   0x8   :  { %285 = vmatpush3.bf16.msra.mxu0 %v317_v15  ;;  %292 = vmatprep.subr.bf16.mxu1 %v355_v16  ;;  %v322_v21 = vld [vmem:[%s451_s3 + $0x18] sm:$0xff]   ;;  %v323_v22 = vld [vmem:[%s451_s3 + $0x20] sm:$0xff]   ;;  %v324_v23 = vld [vmem:[%s451_s3 + $0x28] sm:$0xff]  }
   0x9   :  { %31 = vadd.xlane.f32.xlu0 %v30_v4  ;;  %286 = vmatprep.subr.bf16.mxu0 %v355_v16  ;;  %v325_v35 = vld [vmem:[%s451_s3 + $0x30] sm:$0xff]   ;;  %v326_v36 = vld [vmem:[%s451_s3 + $0x38] sm:$0xff]   ;;  %v255_v37 = vld [vmem:[%s450_s2] ss:$0 sm:$0xff]  ;;  %s357_s3 = smov [#allocation2]  }
   0xa   :  { %308 = vmatprep.mubr.msk.bf16.mxu1 %vm356_vm1, %v355_v16  ;;  %293 = vmatpush3.bf16.msra.mxu1 %v319_v18  ;;  %v259_v47 = vld [vmem:[%s452_s4] ss:$0 sm:$0xff]  ;;  %s244_s17 = sshll.u32 %s357_s3, 4  ;;  %s245_s17 = int_to_ptr.vmem [resolvable:$true] %s244_s17 }
   0xb   :  { %294 = vmatprep.subr.bf16.mxu1 %v355_v16  ;;  %s331_s2 = scalar_lea.vmem %s245_s17, 256  ;;  %p336_p1 = scmp.lt.s32.totalorder %s245_s17, %s245_s17 }
   0xc   :  { %287 = vmatpush3.bf16.msra.mxu0 %v318_v17  ;;  %p332_p0 = scmp.ne.s32.totalorder %s245_s17, %s331_s2  ;;  %p337_p2 = scmp.lt.s32.totalorder %s331_s2, %s331_s2 }
   0xe   :  { %295 = vmatpush3.bf16.msra.mxu1 %v320_v19  ;;  %p338_p3 = por %p337_p2, %p336_p1 }
   0xf   :  { %296 = vmatprep.subr.bf16.mxu1 %v355_v16 }
  0x10   :  { %p339_p4 = pnand %p338_p3, %p332_p0 }
  0x12   :  { %297 = vmatpush3.bf16.msra.mxu1 %v321_v20 }
  0x13   :  { %298 = vmatprep.subr.bf16.mxu1 %v355_v16 }
  0x16   :  { %299 = vmatpush3.bf16.msra.mxu1 %v322_v21 }
  0x17   :  { %300 = vmatprep.subr.bf16.mxu1 %v355_v16 }
  0x1a   :  { %301 = vmatpush3.bf16.msra.mxu1 %v323_v22 }
  0x1b   :  { %302 = vmatprep.subr.bf16.mxu1 %v355_v16 }
  0x1e   :  { %303 = vmatpush3.bf16.msra.mxu1 %v324_v23 }
  0x1f   :  { %304 = vmatprep.subr.bf16.mxu1 %v355_v16 }
  0x22   :  { %305 = vmatpush3.bf16.msra.mxu1 %v325_v35 }
  0x23   :  { %306 = vmatprep.subr.bf16.mxu1 %v355_v16 }
  0x26   :  { %307 = vmatpush3.bf16.msra.mxu1 %v326_v36 }
  0x92   :  { %v29_v5 = vpop.xlane.xlu0 %28 }
  0x93   :  { %v34_v6 = vmul.f32 0.03125, %v29_v5 }
  0x95   :  { %v36_v7 = vsub.f32 %v270_v1, %v34_v6 }
  0x96   :  { %v32_v8 = vpop.xlane.xlu0 %31 }
  0x97   :  { %v35_v9 = vmul.f32 0.03125, %v32_v8  ;;  %v38_v10 = vmul.f32 %v36_v7, %v36_v7 }
  0x99   :  { %v37_v11 = vsub.f32 %v271_v2, %v35_v9  ;;  %v40_v12 = vsel %vm26_vm0, %v38_v10, 0.0 }
  0x9a   :  { %41 = vadd.xlane.f32.xlu1 %v40_v12 }
  0x9b   :  { %v39_v13 = vmul.f32 %v37_v11, %v37_v11 }
  0x9d   :  { %v43_v14 = vsel %vm26_vm0, %v39_v13, 0.0 }
  0x9e   :  { %44 = vadd.xlane.f32.xlu1 %v43_v14 }
 0x127   :  { %v42_v24 = vpop.xlane.xlu1 %41 }
 0x128   :  { %v46_v25 = vmul.f32 0.03125, %v42_v24 }
 0x12a   :  { %v48_v26 = vadd.f32 1e-05, %v46_v25 }
 0x12b   :  { %v45_v27 = vpop.xlane.xlu1 %44 }
 0x12c   :  { %v47_v28 = vmul.f32 0.03125, %v45_v27  ;;  %327 = vrsqrt.f32 %v48_v26 }
 0x12e   :  { %v49_v29 = vadd.f32 1e-05, %v47_v28 }
 0x130   :  { %329 = vrsqrt.f32 %v49_v29 }
 0x136   :  { %v328_v30 = vpop.eup %327 }
 0x137   :  { %v52_v32 = vmul.f32 %v328_v30, %v36_v7 }
 0x13a   :  { %v330_v31 = vpop.eup %329 }
 0x13b   :  { %v53_v33 = vmul.f32 %v330_v31, %v37_v11 }
 0x13d   :  { %v54_v34 = vpack.c.bf16 %v53_v33, %v52_v32 }
 0x13f   :  { %289 = vmatmul.mubr.msk.bf16.vlgmr.msra.gmra.mrb[0].mxu0 %vm26_vm0, %v54_v34 }
 0x212   :  { %v115_v38 = vpop.f32.mrb[0].mxu0 }
 0x213   :  { %v116_v39 = vadd.f32 %v255_v37, %v115_v38  ;;  %v290_v40 = vpop.f32.mrb[1].mxu0 }
 0x214   :  { %v118_v41 = vpop.f32.mrb[2].mxu0 }
 0x215   :  { %v119_v42 = vadd.f32 %v255_v37, %v118_v41  ;;  %v291_v43 = vpop.f32.mrb[3].mxu0  ;;  %v122_v44 = vmax.f32 %v116_v39, 0.0 }
 0x217   :  { %v123_v45 = vmax.f32 %v119_v42, 0.0 }
 0x219   :  { %v124_v46 = vpack.c.bf16 %v123_v45, %v122_v44 }
 0x21b   :  { %309 = vmatmul.mubr.bf16.vlgmr.msra.gmra.mrb[0].mxu1 %v124_v46 }
 0x2ee   :  { %v230_v48 = vpop.f32.mrb[0].mxu1 }
 0x2ef   :  { %v231_v49 = vadd.f32 %v259_v47, %v230_v48  ;;  %v310_v50 = vpop.f32.mrb[1].mxu1 }
 0x2f0   :  { %v233_v51 = vpop.f32.mrb[2].mxu1 }
 0x2f1   :  { %237 = vst.msk [vmem:[#allocation2] sm:$0xff] %vm26_vm0, %v231_v49  ;;  %v234_v52 = vadd.f32 %v259_v47, %v233_v51  ;;  %v311_v53 = vpop.f32.mrb[3].mxu1 }
 0x2f3   :  { %238 = vst.msk [vmem:[#allocation2 + $0x8] sm:$0xff] %vm26_vm0, %v234_v52 }
 0x2f4   :  { %342 = shalt.err (!%p339_p4)
}
 0x2f5   :  { %s343_s19 = scalar_lea.hbm %s453_s5, 256 }
 0x2f6   :  { %p344_p5 = scmp.ne.s32.totalorder %s453_s5, %s343_s19  ;;  %p347_p6 = scmp.lt.u32.totalorder %s343_s19, %s453_s5 }
 0x2f8   :  { %p349_p7 = pnand %p347_p6, %p344_p5 }
 0x2fa   :  { %352 = shalt.err (!%p349_p7)
}
 0x2fb   :  { %s358_s23 = smov 128   ;;  %s359_s24 = smov 8  }
 0x2fc   :  { %250 = dma.vmem_to_hbm [thread:$0]  %s245_s17, 256, %s453_s5, [#allocation3], %s358_s23, %s358_s23, %s359_s24  }
 0x2fd   :  { %353 = dma.done.wait [#allocation3], 256  }
 0x2fe   :  { %354 = vsyncadd [#allocation3], 4294967040 }
 0x2ff   :  { %254 = vsyncpa [#allocation3], 1 }

</bundles_post_ra>
